<compile_context>
chip_gen: v7x
topology: tpu7x:2x2x1
jax: 0.10.0
libtpu: 0.0.40
codegen_flags: <defaults>
</compile_context>

<pallas_src>
import jax
import jax.numpy as jnp
from jax.experimental import pallas as pl
from jax.experimental.pallas import tpu as pltpu


def _classhead_kernel(w_ref, x_ref, b_ref, o_ref):
    # w_ref: (C, K)   x_ref: (C, T)   b_ref: (1, K)   o_ref: (T, K)
    # Contract C (dim 0 of both) -> (T, K); f32 accumulate on the MXU.
    acc = jax.lax.dot_general(
        x_ref[...], w_ref[...],
        dimension_numbers=(((0,), (0,)), ((), ())),
        preferred_element_type=jnp.float32,
    )
    o_ref[...] = (acc + b_ref[...].astype(jnp.float32)).astype(o_ref.dtype)


def class_head_forward(x_nchw, weight, bias, num_anchors, *,
                       vmem_budget_bytes=24 * 1024 * 1024):
    """x_nchw: (N, C, H, W); weight: (K, C) [torch conv weight, squeezed];
    bias: (K,).  Returns (N, H*W*num_anchors, 2)."""
    N, C, H, W = x_nchw.shape
    K = num_anchors * 2
    assert weight.shape == (K, C) and bias.shape == (K,)
    HW = H * W

    # NCHW is already channels-major per image: x[n] is (C, H*W). Free reshape.
    x_flat = x_nchw.reshape(N, C, HW)
    w_ck = jnp.transpose(weight)     # (C, K): tiny (K*C) relayout, negligible
    b_1k = bias.reshape(1, K)

    # --- tile-size selection ------------------------------------------------
    itemsize = jnp.dtype(x_nchw.dtype).itemsize
    out_itemsize = itemsize
    # Constant VMEM: double-buffered, lane-padded weight tile (C, K->128) + bias.
    budget = vmem_budget_bytes - (2 * C * 128 * 4 + 4096)
    # Per HW-column VMEM: double-buffered x tile (C rows) + double-buffered,
    # lane-padded output tile (K padded to 128 lanes).
    per_col = 2 * C * itemsize + 2 * 128 * out_itemsize
    cap_t = max(128, ((budget // per_col) // 128) * 128)

    hw_chunks = pl.cdiv(HW, 128)               # number of 128-wide lane chunks
    n_tiles = pl.cdiv(hw_chunks * 128, cap_t)  # fewest tiles satisfying the cap
    if N * n_tiles < 2 and hw_chunks >= 2:
        n_tiles = pl.cdiv(2, N)                # keep both v7x TensorCores fed
    t = 128 * pl.cdiv(hw_chunks, n_tiles)      # balanced, multiple of 128, <= cap
    grid = (N, pl.cdiv(HW, t))                 # ragged last tile handled by Pallas
    # -------------------------------------------------------------------------

    out = pl.pallas_call(
        _classhead_kernel,
        out_shape=jax.ShapeDtypeStruct((N, HW, K), x_nchw.dtype),
        grid_spec=pltpu.PrefetchScalarGridSpec(
            num_scalar_prefetch=0,
            grid=grid,
            in_specs=[
                pl.BlockSpec((C, K), lambda n, j: (0, 0)),           # weight
                pl.BlockSpec((None, C, t), lambda n, j: (n, 0, j)),  # x
                pl.BlockSpec((1, K), lambda n, j: (0, 0)),           # bias
            ],
            out_specs=pl.BlockSpec((None, t, K), lambda n, j: (n, j, 0)),
        ),
        compiler_params=pltpu.CompilerParams(
            dimension_semantics=("parallel", "parallel"),
            vmem_limit_bytes=32 * 1024 * 1024,
        ),
        cost_estimate=pl.CostEstimate(
            flops=2 * N * HW * C * K,
            transcendentals=0,
            bytes_accessed=itemsize * N * HW * (C + K) + 4 * (K * C + K),
        ),
    )(w_ck, x_flat, b_1k)

    # (N, HW, K=A*2) -> (N, HW*A, 2) is a free row-major reshape and matches
    # permute(0,2,3,1).contiguous().view(N,-1,2) since channel k = a*2 + c.
    return out.reshape(N, HW * num_anchors, 2)


if __name__ == "__main__":
    # Small shapes consistent with the module (inchannels scaled down).
    N, C_in, H, W = 2, 32, 16, 16
    num_anchors = 3
    K = num_anchors * 2

    key = jax.random.PRNGKey(0)
    kx, kw, kb = jax.random.split(key, 3)
    x = jax.random.normal(kx, (N, C_in, H, W), dtype=jnp.float32)
    # Deterministic synthetic parameters (shapes from nn.Conv2d(C_in, K, 1)).
    weight = jax.random.normal(kw, (K, C_in), dtype=jnp.float32) * 0.05
    bias = jax.random.normal(kb, (K,), dtype=jnp.float32) * 0.05

    out = class_head_forward(x, weight, bias, num_anchors)
    out = jax.block_until_ready(out)

    # Cross-check against a plain-JAX reference of the same math.
    ref = (jnp.einsum("nchw,kc->nhwk", x, weight) + bias).reshape(
        N, H * W * num_anchors, 2)
    assert out.shape == (N, H * W * num_anchors, 2)
    assert jnp.allclose(out, ref, atol=1e-5, rtol=1e-5)

    print("KERNEL_OK")
</pallas_src>

<mosaic_0001>
module attributes {stable_mosaic.version = 11 : i64} {
  func.func @_classhead_kernel(%arg0: i32, %arg1: i32, %arg2: memref<32x6xf32, #tpu.memory_space<vmem>>, %arg3: memref<1x32x256xf32, #tpu.memory_space<vmem>>, %arg4: memref<1x6xf32, #tpu.memory_space<vmem>>, %arg5: memref<1x256x6xf32, #tpu.memory_space<vmem>>) attributes {dimension_semantics = [#tpu.dimension_semantics<parallel>, #tpu.dimension_semantics<parallel>], iteration_bounds = array<i64: 2, 1>, scalar_prefetch = 0 : i64, scratch_operands = 0 : i64, tpu.core_type = #tpu.core_type<tc>, window_params = [{pipeline_mode = #tpu.pipeline_mode<synchronous>, transform_indices = @transform_0, window_bounds = array<i64: 32, 6>}, {transform_indices = @transform_1, window_bounds = array<i64: 1, 32, 256>}, {pipeline_mode = #tpu.pipeline_mode<synchronous>, transform_indices = @transform_2, window_bounds = array<i64: 1, 6>}, {transform_indices = @transform_3, window_bounds = array<i64: 1, 256, 6>}]} {
    %c0 = arith.constant 0 : index
    %c0_0 = arith.constant 0 : index
    %c0_1 = arith.constant 0 : index
    %0 = vector.load %arg3[%c0, %c0_0, %c0_1] : memref<1x32x256xf32, #tpu.memory_space<vmem>>, vector<1x32x256xf32>
    %1 = vector.shape_cast %0 : vector<1x32x256xf32> to vector<32x256xf32>
    %c0_2 = arith.constant 0 : index
    %c0_3 = arith.constant 0 : index
    %2 = vector.load %arg2[%c0_2, %c0_3] : memref<32x6xf32, #tpu.memory_space<vmem>>, vector<32x6xf32>
    %cst = arith.constant dense<0.000000e+00> : vector<256x6xf32>
    %3 = tpu.matmul %1, %2, %cst {dimension_numbers = #tpu.dot_dimension_numbers<[0], [0], [1], [1], [0, 1, 1, 1], [], []>} : vector<32x256xf32>, vector<32x6xf32>, vector<256x6xf32> -> vector<256x6xf32>
    %c0_4 = arith.constant 0 : index
    %c0_5 = arith.constant 0 : index
    %4 = vector.load %arg4[%c0_4, %c0_5] : memref<1x6xf32, #tpu.memory_space<vmem>>, vector<1x6xf32>
    %5 = vector.broadcast %4 : vector<1x6xf32> to vector<256x6xf32>
    %6 = arith.addf %3, %5 : vector<256x6xf32>
    %c0_6 = arith.constant 0 : index
    %c0_7 = arith.constant 0 : index
    %c0_8 = arith.constant 0 : index
    %7 = vector.load %arg5[%c0_6, %c0_7, %c0_8] : memref<1x256x6xf32, #tpu.memory_space<vmem>>, vector<1x256x6xf32>
    %8 = vector.shape_cast %7 : vector<1x256x6xf32> to vector<256x6xf32>
    %9 = vector.shape_cast %6 : vector<256x6xf32> to vector<1x256x6xf32>
    tpu.vector_store %arg5[%c0_6, %c0_7, %c0_8], %9 {strides = array<i32>} : memref<1x256x6xf32, #tpu.memory_space<vmem>>, vector<1x256x6xf32>,
    return
  }
  func.func @transform_0(%arg0: i32, %arg1: i32) -> (i32, i32) {
    %c0_i32 = arith.constant 0 : i32
    %c0_i32_0 = arith.constant 0 : i32
    %c0_i32_1 = arith.constant 0 : i32
    return %c0_i32, %c0_i32_0 : i32, i32
  }
  func.func @transform_1(%arg0: i32, %arg1: i32) -> (i32, i32, i32) {
    %c0_i32 = arith.constant 0 : i32
    %c0_i32_0 = arith.constant 0 : i32
    return %arg0, %c0_i32, %arg1 : i32, i32, i32
  }
  func.func @transform_2(%arg0: i32, %arg1: i32) -> (i32, i32) {
    %c0_i32 = arith.constant 0 : i32
    %c0_i32_0 = arith.constant 0 : i32
    %c0_i32_1 = arith.constant 0 : i32
    return %c0_i32, %c0_i32_0 : i32, i32
  }
  func.func @transform_3(%arg0: i32, %arg1: i32) -> (i32, i32, i32) {
    %c0_i32 = arith.constant 0 : i32
    %c0_i32_0 = arith.constant 0 : i32
    return %arg0, %arg1, %c0_i32 : i32, i32, i32
  }
}

</mosaic_0001>

<bundles_post_ra>
// kernel: tpu_custom_call.1
= control target key start
LH: loop header
LB: loop body
LE: loop exit
PB: predicated region body
PF: predicated region fallthrough
CT: control target
= control target key end

     0   :  { %8 = vsyncpa [#allocation3], 0  ;;  %s1338_s0 = inlined_call_operand.vmem [shape: f32[32,6], index: 0, kind: input, shape index: {}]   ;;  %s1339_s1 = inlined_call_operand.hbm [shape: f32[2,32,256], index: 1, kind: input, shape index: {}]   ;;  %s1340_s2 = inlined_call_operand.vmem [shape: f32[1,6], index: 2, kind: input, shape index: {}]   ;;  %s1341_s3 = inlined_call_operand.vmem [shape: f32[2,256,6], index: 3, kind: output, shape index: {}]  }
   0x1   :  { %10 = vsyncpa [#allocation3 + $0x1], 0  ;;  %s1067_s12 = smov 0   ;;  %s1069_s13 = smov 0  }
   0x2   :  { %s1071_s14 = smov 0   ;;  %s1073_s15 = smov 0  }
   0x3   :  { %s1075_s16 = smov 0   ;;  %s1077_s17 = smov 0  }
   0x4 LB: > { %s752_s18 = sadd.s32 4294967295, %s1042_s17   ;;  %s28_s19 = sadd.s32 1, %s1038_s16  ;;  %s1042_s17 = sphi %s1077_s17, %s16_s17   ;;  %s1038_s16 = sphi %s1075_s16, %s1349_s16   ;;  %s1034_s15 = sphi %s1073_s15, %s1348_s15   ;;  %s1030_s14 = sphi %s1071_s14, %s1347_s14   ;;  %s1026_s13 = sphi %s1069_s13, %s1346_s13   ;;  %s1022_s12 = sphi %s1067_s12, %s1345_s12  }
   0x5   : > { %p30_p0 = scmp.ge.s32.totalorder %s28_s19, 2  ;;  %s58_s20 = sadd.s32 1, %s1030_s14 }
   0x6   : > { %p65_p1 = scmp.ne.s32.totalorder %s1030_s14, %s1026_s13  ;;  %p66_p2 = scmp.eq.s32.totalorder %s1042_s17, 0 }
   0x7   : > { %s1351_s19 = smov (%p30_p0, %s28_s19), 0  ;;  %p71_p4 = scmp.ne.s32.totalorder %s1026_s13, %s1022_s12 }
   0x8   : > { %p1103_p3 = por %p66_p2, %p65_p1  ;;  %s53_s22 = ssub.s32 %s1038_s16, %s1351_s19 }
   0x9   : > { %p72_p5 = scmp.eq.s32.totalorder %s752_s18, 0  ;;  %p56_p6 = scmp.eq.s32.totalorder %s53_s22, 0 }
   0xa   : > { %p910_p8 = scmp.lt.s32.totalorder %s1042_s17, 2  ;;  %s150_s25 = sand.u32 1, %s1030_s14  }
   0xb   : > { %p1110_p7 = por %p72_p5, %p71_p4  ;;  %s798_s26 = sshll.u32 %s1038_s16, 10 }
   0xc   : > { %s1116_s24 = scalar_select %p56_p6, %s1030_s14, %s58_s20  }
   0xd   : > { %s756_s27 = sshll.u32 %s150_s25, 6  ;;  %s1123_s30 = scalar_lea.hbm %s1339_s1, %s798_s26 }
   0xe   : > { %s154_s4 = scalar_lea.vmem [#allocation2], %s756_s27  ;;  %p1127_p9 = pnand %p910_p8, %p1103_p3 }
   0xf   : > { %s163_s5 = sshll.u32 %s154_s4, 4  ;;  %s1133_s7 = scalar_lea.sflag [#allocation3], %s150_s25  ;;  %s1131_s5 = int_to_ptr.vmem [resolvable:$true] %s163_s5 }
  0x10   : > { %s962_s8 = scalar_lea.hbm %s1123_s30, 1024  ;;  %p964_p11 = pneg %p1127_p9 }
  0x11   : > { %p963_p10 = scmp.ne.s32.totalorder %s1123_s30, %s962_s8  ;;  %s967_s11 = scalar_lea.hbm %s1339_s1, 2048 }
  0x12   : > { %p968_p0 = scmp.lt.u32.totalorder %s1123_s30, %s1339_s1  ;;  %p969_p1 = scmp.lt.u32.totalorder %s967_s11, %s962_s8 }
  0x13   : > { %p965_p12 = pnand %p964_p11, %p963_p10  ;;  %p971_p3 = scmp.lt.u32.totalorder %s962_s8, %s1123_s30 }
  0x14   : > { %p970_p2 = por %p969_p1, %p968_p0 }
  0x15   : > { %p966_p13 = pneg %p965_p12 }
  0x16   : > { %p972_p4 = por %p971_p3, %p970_p2 }
  0x18   : > { %p973_p5 = pnand %p972_p4, %p966_p13 }
  0x1a   : > { %976 = shalt.err (!%p973_p5)
}
  0x1b   : > { %s977_s20 = scalar_lea.vmem %s1131_s5, 1024  ;;  %s1044_s21 = smov [#allocation2]  }
  0x1c   : > { %p978_p6 = scmp.ne.s32.totalorder %s1131_s5, %s977_s20  ;;  %s982_s22 = sshll.u32 %s1044_s21, 4  ;;  %s983_s22 = int_to_ptr.vmem [resolvable:$false] %s982_s22 }
  0x1d   : > { %s984_s25 = scalar_lea.vmem %s983_s22, 2048  ;;  %p985_p12 = scmp.lt.s32.totalorder %s1131_s5, %s983_s22 }
  0x1e   : > { %p980_p8 = pnand %p978_p6, %p964_p11  ;;  %p986_p0 = scmp.lt.s32.totalorder %s984_s25, %s977_s20 }
  0x20   : > { %p981_p10 = pneg %p980_p8  ;;  %p987_p1 = por %p986_p0, %p985_p12 }
  0x22   : > { %p988_p2 = pnand %p987_p1, %p981_p10 }
  0x24   : > { %991 = shalt.err (!%p988_p2)
}
  0x25   : > { %s1045_s26 = smov 256   ;;  %s1046_s27 = smov 16  }
  0x26   : > { %909 = dma.hbm_to_vmem [thread:$0]  (!%p1127_p9), %s1123_s30, 1024, %s1131_s5, %s1133_s7, %s1045_s26, %s1045_s26, %s1046_s27  }
  0x27   : > { %p759_p11 = scmp.ge.s32.totalorder %s1042_s17, 1  ;;  %p171_p13 = scmp.lt.s32.totalorder %s1042_s17, 3 }
  0x29   : > { %p172_p3 = pnand %p759_p11, %p171_p13 }
  0x2a   : > { %s177_s28 = sand.u32 (!%p172_p3), 1, %s1026_s13  }
  0x2b   : > { %175 = sbr.rel (%p172_p3) target bundleno = 457 (0x1c9), region = 32  ;;  %s760_s29 = sshll.u32 (!%p172_p3), %s177_s28, 6 }
  0x2c   : > { %s178_s4 = scalar_lea.sflag (!%p172_p3), [#allocation3], %s177_s28  ;;  %s181_s8 = scalar_lea.vmem (!%p172_p3), [#allocation2], %s760_s29 }
  0x32   : > { %1017 = dma.done.wait (%p1110_p7), %s178_s4, 1024  }
  0x33   : > { %1019 = vsyncadd (%p1110_p7), %s178_s4, 4294966272  ;;  %v220_v0 = vld [vmem:[%s181_s8 + $0x8] sm:$0xff]  ;;  %v219_v1 = vld [vmem:[%s181_s8] sm:$0xff]  ;;  %vm302_vm0 = vcmask 261120   ;;  %p210_p7 = scmp.lt.s32.totalorder %s1034_s15, 1  ;;  %vm624_vm1 = vcmask 48128  }
  0x34   : > { %270 = vxpose.xlu1.b32.start [1/4] (short) %v220_v0, 128  ;;  %238 = vxpose.xlu0.b32.start [1/4] (short) %v219_v1, 128  ;;  %v222_v2 = vld [vmem:[%s181_s8 + $0x18] sm:$0xff]  ;;  %v221_v3 = vld [vmem:[%s181_s8 + $0x10] sm:$0xff]  ;;  %v227_v4 = vld [vmem:[%s1338_s0] sm:$0xff] }
  0x35   : > { %v228_v5 = vld [vmem:[%s1338_s0 + $0x8] sm:$0xff]  ;;  %v229_v6 = vld [vmem:[%s1338_s0 + $0x10] sm:$0xff]  ;;  %v230_v7 = vld [vmem:[%s1338_s0 + $0x18] sm:$0xff]  ;;  %s1353_s15 = smov (!%p210_p7, %s1034_s15), 1 }
  0x36   : > { %v892_v8 = vpack.c.bf16 %v228_v5, %v227_v4  ;;  %v896_v9 = vpack.c.bf16 %v230_v7, %v229_v6  ;;  %v224_v10 = vld [vmem:[%s181_s8 + $0x28] sm:$0xff]  ;;  %v223_v11 = vld [vmem:[%s181_s8 + $0x20] sm:$0xff]  ;;  %v226_v12 = vld [vmem:[%s181_s8 + $0x38] sm:$0xff]  ;;  %s799_s12 = sshll.u32 %s1353_s15, 8 }
  0x37   : > { %v225_v13 = vld [vmem:[%s181_s8 + $0x30] sm:$0xff]  ;;  %v1217_v46 = vld [vmem:[%s1340_s2] ss:$0 sm:$0xff]  ;;  %s1222_s25 = scalar_lea.vmem %s1341_s3, %s799_s12 }
  0x38   : > { %271 = vxpose.xlu1.b32.cont [2/4] (short) %v222_v2, 128  ;;  %239 = vxpose.xlu0.b32.cont [2/4] (short) %v221_v3, 128 }
  0x39   : > { %893 = vmatprep.subr.bf16.mxu0 %v892_v8  ;;  %900 = vmatprep.subr.bf16.mxu1 %v892_v8 }
  0x3a   : > { %895 = vmatpush3.bf16.msra.mxu0 %v892_v8  ;;  %902 = vmatpush3.bf16.msra.mxu1 %v892_v8 }
  0x3b   : > { %897 = vmatprep.subr.bf16.mxu0 %v896_v9  ;;  %901 = vmatprep.subr.bf16.mxu1 %v896_v9 }
  0x3c   : > { %272 = vxpose.xlu1.b32.cont [3/4] (short) %v224_v10, 128  ;;  %240 = vxpose.xlu0.b32.cont [3/4] (short) %v223_v11, 128 }
  0x3e   : > { %899 = vmatpush3.bf16.msra.mxu0 %v896_v9  ;;  %903 = vmatpush3.bf16.msra.mxu1 %v896_v9 }
  0x40   : > { %273 = vxpose.xlu1.b32.end [4/4] (short) %v226_v12, 128  ;;  %241 = vxpose.xlu0.b32.end [4/4] (short) %v225_v13, 128 }
  0xb4   : > { %v286_v14 = vpop.trf.xlu1  ;;  %v254_v15 = vpop.trf.xlu0 }
  0xb5   : > { %844 = vmatprep.mubr.msk.f32.mxu0 %vm302_vm0, %v254_v15  ;;  %868 = vmatprep.mubr.msk.f32.mxu1 %vm302_vm0, %v286_v14 }
  0xb8   : > { %v287_v16 = vpop.trf.xlu1  ;;  %v255_v17 = vpop.trf.xlu0 }
  0xb9   : > { %845 = vmatmul.mubr.msk.f32.vlgmr.msra.gmra.mrb[0].mxu0 %vm302_vm0, %v255_v17  ;;  %869 = vmatmul.mubr.msk.f32.vlgmr.msra.gmra.mrb[0].mxu1 %vm302_vm0, %v287_v16 }
  0xbc   : > { %v288_v18 = vpop.trf.xlu1  ;;  %v256_v19 = vpop.trf.xlu0 }
  0xbd   : > { %847 = vmatprep.mubr.msk.f32.mxu0 %vm302_vm0, %v256_v19  ;;  %871 = vmatprep.mubr.msk.f32.mxu1 %vm302_vm0, %v288_v18 }
  0xc0   : > { %v289_v20 = vpop.trf.xlu1  ;;  %v257_v21 = vpop.trf.xlu0 }
  0xc1   : > { %848 = vmatmul.mubr.msk.f32.gmra.mrb[2].mxu0 %vm302_vm0, %v257_v21  ;;  %872 = vmatmul.mubr.msk.f32.gmra.mrb[2].mxu1 %vm302_vm0, %v289_v20 }
  0xc4   : > { %v290_v22 = vpop.trf.xlu1  ;;  %v258_v23 = vpop.trf.xlu0 }
  0xc5   : > { %850 = vmatprep.mubr.msk.f32.mxu0 %vm302_vm0, %v258_v23  ;;  %874 = vmatprep.mubr.msk.f32.mxu1 %vm302_vm0, %v290_v22 }
  0xc8   : > { %v291_v24 = vpop.trf.xlu1  ;;  %v259_v25 = vpop.trf.xlu0 }
  0xc9   : > { %851 = vmatmul.mubr.msk.f32.gmra.mrb[4].mxu0 %vm302_vm0, %v259_v25  ;;  %875 = vmatmul.mubr.msk.f32.gmra.mrb[4].mxu1 %vm302_vm0, %v291_v24 }
  0xcc   : > { %v292_v26 = vpop.trf.xlu1  ;;  %v260_v27 = vpop.trf.xlu0 }
  0xcd   : > { %853 = vmatprep.mubr.msk.f32.mxu0 %vm302_vm0, %v260_v27  ;;  %877 = vmatprep.mubr.msk.f32.mxu1 %vm302_vm0, %v292_v26 }
  0xd0   : > { %v293_v28 = vpop.trf.xlu1  ;;  %v261_v29 = vpop.trf.xlu0 }
  0xd1   : > { %854 = vmatmul.mubr.msk.f32.gmra.mrb[6].mxu0 %vm302_vm0, %v261_v29  ;;  %878 = vmatmul.mubr.msk.f32.gmra.mrb[6].mxu1 %vm302_vm0, %v293_v28 }
  0xd4   : > { %v294_v30 = vpop.trf.xlu1  ;;  %v262_v31 = vpop.trf.xlu0 }
  0xd5   : > { %856 = vmatprep.mubr.msk.f32.mxu0 %vm302_vm0, %v262_v31  ;;  %880 = vmatprep.mubr.msk.f32.mxu1 %vm302_vm0, %v294_v30 }
  0xd8   : > { %v295_v32 = vpop.trf.xlu1  ;;  %v263_v33 = vpop.trf.xlu0 }
  0xd9   : > { %857 = vmatmul.mubr.msk.f32.gmra.mrb[8].mxu0 %vm302_vm0, %v263_v33  ;;  %881 = vmatmul.mubr.msk.f32.gmra.mrb[8].mxu1 %vm302_vm0, %v295_v32 }
  0xdc   : > { %v296_v34 = vpop.trf.xlu1  ;;  %v264_v35 = vpop.trf.xlu0 }
  0xdd   : > { %859 = vmatprep.mubr.msk.f32.mxu0 %vm302_vm0, %v264_v35  ;;  %883 = vmatprep.mubr.msk.f32.mxu1 %vm302_vm0, %v296_v34 }
  0xe0   : > { %v297_v36 = vpop.trf.xlu1  ;;  %v265_v37 = vpop.trf.xlu0 }
  0xe1   : > { %860 = vmatmul.mubr.msk.f32.gmra.mrb[10].mxu0 %vm302_vm0, %v265_v37  ;;  %884 = vmatmul.mubr.msk.f32.gmra.mrb[10].mxu1 %vm302_vm0, %v297_v36 }
  0xe4   : > { %v298_v38 = vpop.trf.xlu1  ;;  %v266_v39 = vpop.trf.xlu0 }
  0xe5   : > { %862 = vmatprep.mubr.msk.f32.mxu0 %vm302_vm0, %v266_v39  ;;  %886 = vmatprep.mubr.msk.f32.mxu1 %vm302_vm0, %v298_v38 }
  0xe8   : > { %v299_v40 = vpop.trf.xlu1  ;;  %v267_v41 = vpop.trf.xlu0 }
  0xe9   : > { %863 = vmatmul.mubr.msk.f32.gmra.mrb[12].mxu0 %vm302_vm0, %v267_v41  ;;  %887 = vmatmul.mubr.msk.f32.gmra.mrb[12].mxu1 %vm302_vm0, %v299_v40 }
  0xec   : > { %v300_v42 = vpop.trf.xlu1  ;;  %v268_v43 = vpop.trf.xlu0 }
  0xed   : > { %865 = vmatprep.mubr.msk.f32.mxu0 %vm302_vm0, %v268_v43  ;;  %889 = vmatprep.mubr.msk.f32.mxu1 %vm302_vm0, %v300_v42 }
  0xf0   : > { %v301_v44 = vpop.trf.xlu1  ;;  %v269_v45 = vpop.trf.xlu0 }
  0xf1   : > { %866 = vmatmul.mubr.msk.f32.gmra.mrb[14].mxu0 %vm302_vm0, %v269_v45  ;;  %890 = vmatmul.mubr.msk.f32.gmra.mrb[14].mxu1 %vm302_vm0, %v301_v44 }
 0x18c   : > { %v846_v47 = vpop.f32.mrb[0].mxu0  ;;  %v870_v48 = vpop.f32.mrb[0].mxu1 }
 0x18d   : > { %v471_v49 = vadd.f32 %v846_v47, %v1217_v46  ;;  %v551_v50 = vadd.f32 %v870_v48, %v1217_v46  ;;  %v465_v51 = vpop.f32.mrb[1].mxu0  ;;  %v545_v52 = vpop.f32.mrb[1].mxu1 }
 0x18e   : > { %v466_v53 = vadd.f32 %v1217_v46, %v465_v51  ;;  %v546_v54 = vadd.f32 %v1217_v46, %v545_v52 }
 0x18f   : > { %626 = vst.msk [vmem:[%s1222_s25 + $0x8] sm:$0xff] %vm624_vm1, %v471_v49  ;;  %642 = vst.msk [vmem:[%s1222_s25 + $0x88] sm:$0xff] %vm624_vm1, %v551_v50 }
 0x190   : > { %625 = vst.msk [vmem:[%s1222_s25] sm:$0xff] %vm624_vm1, %v466_v53  ;;  %641 = vst.msk [vmem:[%s1222_s25 + $0x80] sm:$0xff] %vm624_vm1, %v546_v54 }
 0x194   : > { %v849_v55 = vpop.f32.mrb[2].mxu0  ;;  %v873_v56 = vpop.f32.mrb[2].mxu1 }
 0x195   : > { %v481_v57 = vadd.f32 %v849_v55, %v1217_v46  ;;  %v561_v58 = vadd.f32 %v873_v56, %v1217_v46  ;;  %v475_v59 = vpop.f32.mrb[3].mxu0  ;;  %v555_v60 = vpop.f32.mrb[3].mxu1 }
 0x196   : > { %v476_v61 = vadd.f32 %v1217_v46, %v475_v59  ;;  %v556_v62 = vadd.f32 %v1217_v46, %v555_v60 }
 0x197   : > { %628 = vst.msk [vmem:[%s1222_s25 + $0x18] sm:$0xff] %vm624_vm1, %v481_v57  ;;  %644 = vst.msk [vmem:[%s1222_s25 + $0x98] sm:$0xff] %vm624_vm1, %v561_v58 }
 0x198   : > { %627 = vst.msk [vmem:[%s1222_s25 + $0x10] sm:$0xff] %vm624_vm1, %v476_v61  ;;  %643 = vst.msk [vmem:[%s1222_s25 + $0x90] sm:$0xff] %vm624_vm1, %v556_v62 }
 0x19c   : > { %v852_v63 = vpop.f32.mrb[4].mxu0  ;;  %v876_v0 = vpop.f32.mrb[4].mxu1 }
 0x19d   : > { %v491_v1 = vadd.f32 %v852_v63, %v1217_v46  ;;  %v571_v2 = vadd.f32 %v876_v0, %v1217_v46  ;;  %v485_v3 = vpop.f32.mrb[5].mxu0  ;;  %v565_v4 = vpop.f32.mrb[5].mxu1 }
 0x19e   : > { %v486_v5 = vadd.f32 %v1217_v46, %v485_v3  ;;  %v566_v6 = vadd.f32 %v1217_v46, %v565_v4 }
 0x19f   : > { %630 = vst.msk [vmem:[%s1222_s25 + $0x28] sm:$0xff] %vm624_vm1, %v491_v1  ;;  %646 = vst.msk [vmem:[%s1222_s25 + $0xa8] sm:$0xff] %vm624_vm1, %v571_v2 }
 0x1a0   : > { %629 = vst.msk [vmem:[%s1222_s25 + $0x20] sm:$0xff] %vm624_vm1, %v486_v5  ;;  %645 = vst.msk [vmem:[%s1222_s25 + $0xa0] sm:$0xff] %vm624_vm1, %v566_v6 }
 0x1a4   : > { %v855_v7 = vpop.f32.mrb[6].mxu0  ;;  %v879_v8 = vpop.f32.mrb[6].mxu1 }
 0x1a5   : > { %v501_v9 = vadd.f32 %v855_v7, %v1217_v46  ;;  %v581_v10 = vadd.f32 %v879_v8, %v1217_v46  ;;  %v495_v11 = vpop.f32.mrb[7].mxu0  ;;  %v575_v12 = vpop.f32.mrb[7].mxu1 }
 0x1a6   : > { %v496_v13 = vadd.f32 %v1217_v46, %v495_v11  ;;  %v576_v14 = vadd.f32 %v1217_v46, %v575_v12 }
 0x1a7   : > { %632 = vst.msk [vmem:[%s1222_s25 + $0x38] sm:$0xff] %vm624_vm1, %v501_v9  ;;  %648 = vst.msk [vmem:[%s1222_s25 + $0xb8] sm:$0xff] %vm624_vm1, %v581_v10 }
 0x1a8   : > { %631 = vst.msk [vmem:[%s1222_s25 + $0x30] sm:$0xff] %vm624_vm1, %v496_v13  ;;  %647 = vst.msk [vmem:[%s1222_s25 + $0xb0] sm:$0xff] %vm624_vm1, %v576_v14 }
 0x1ac   : > { %v858_v15 = vpop.f32.mrb[8].mxu0  ;;  %v882_v16 = vpop.f32.mrb[8].mxu1 }
 0x1ad   : > { %v511_v17 = vadd.f32 %v858_v15, %v1217_v46  ;;  %v591_v18 = vadd.f32 %v882_v16, %v1217_v46  ;;  %v505_v19 = vpop.f32.mrb[9].mxu0  ;;  %v585_v20 = vpop.f32.mrb[9].mxu1 }
 0x1ae   : > { %v506_v21 = vadd.f32 %v1217_v46, %v505_v19  ;;  %v586_v22 = vadd.f32 %v1217_v46, %v585_v20 }
 0x1af   : > { %634 = vst.msk [vmem:[%s1222_s25 + $0x48] sm:$0xff] %vm624_vm1, %v511_v17  ;;  %650 = vst.msk [vmem:[%s1222_s25 + $0xc8] sm:$0xff] %vm624_vm1, %v591_v18 }
 0x1b0   : > { %633 = vst.msk [vmem:[%s1222_s25 + $0x40] sm:$0xff] %vm624_vm1, %v506_v21  ;;  %649 = vst.msk [vmem:[%s1222_s25 + $0xc0] sm:$0xff] %vm624_vm1, %v586_v22 }
 0x1b4   : > { %v861_v23 = vpop.f32.mrb[10].mxu0  ;;  %v885_v24 = vpop.f32.mrb[10].mxu1 }
 0x1b5   : > { %v521_v25 = vadd.f32 %v861_v23, %v1217_v46  ;;  %v601_v26 = vadd.f32 %v885_v24, %v1217_v46  ;;  %v515_v27 = vpop.f32.mrb[11].mxu0  ;;  %v595_v28 = vpop.f32.mrb[11].mxu1 }
 0x1b6   : > { %v516_v29 = vadd.f32 %v1217_v46, %v515_v27  ;;  %v596_v30 = vadd.f32 %v1217_v46, %v595_v28 }
 0x1b7   : > { %636 = vst.msk [vmem:[%s1222_s25 + $0x58] sm:$0xff] %vm624_vm1, %v521_v25  ;;  %652 = vst.msk [vmem:[%s1222_s25 + $0xd8] sm:$0xff] %vm624_vm1, %v601_v26 }
 0x1b8   : > { %635 = vst.msk [vmem:[%s1222_s25 + $0x50] sm:$0xff] %vm624_vm1, %v516_v29  ;;  %651 = vst.msk [vmem:[%s1222_s25 + $0xd0] sm:$0xff] %vm624_vm1, %v596_v30 }
 0x1bc   : > { %v864_v31 = vpop.f32.mrb[12].mxu0  ;;  %v888_v32 = vpop.f32.mrb[12].mxu1 }
 0x1bd   : > { %v531_v33 = vadd.f32 %v864_v31, %v1217_v46  ;;  %v611_v34 = vadd.f32 %v888_v32, %v1217_v46  ;;  %v525_v35 = vpop.f32.mrb[13].mxu0  ;;  %v605_v36 = vpop.f32.mrb[13].mxu1 }
 0x1be   : > { %v526_v37 = vadd.f32 %v1217_v46, %v525_v35  ;;  %v606_v38 = vadd.f32 %v1217_v46, %v605_v36 }
 0x1bf   : > { %638 = vst.msk [vmem:[%s1222_s25 + $0x68] sm:$0xff] %vm624_vm1, %v531_v33  ;;  %654 = vst.msk [vmem:[%s1222_s25 + $0xe8] sm:$0xff] %vm624_vm1, %v611_v34 }
 0x1c0   : > { %637 = vst.msk [vmem:[%s1222_s25 + $0x60] sm:$0xff] %vm624_vm1, %v526_v37  ;;  %653 = vst.msk [vmem:[%s1222_s25 + $0xe0] sm:$0xff] %vm624_vm1, %v606_v38 }
 0x1c4   : > { %v867_v39 = vpop.f32.mrb[14].mxu0  ;;  %v891_v40 = vpop.f32.mrb[14].mxu1 }
 0x1c5   : > { %v541_v41 = vadd.f32 %v867_v39, %v1217_v46  ;;  %v621_v42 = vadd.f32 %v891_v40, %v1217_v46  ;;  %v535_v43 = vpop.f32.mrb[15].mxu0  ;;  %v615_v44 = vpop.f32.mrb[15].mxu1 }
 0x1c6   : > { %v536_v45 = vadd.f32 %v1217_v46, %v535_v43  ;;  %v616_v47 = vadd.f32 %v1217_v46, %v615_v44 }
 0x1c7   : > { %640 = vst.msk [vmem:[%s1222_s25 + $0x78] sm:$0xff] %vm624_vm1, %v541_v41  ;;  %656 = vst.msk [vmem:[%s1222_s25 + $0xf8] sm:$0xff] %vm624_vm1, %v621_v42 }
 0x1c8   : > { %639 = vst.msk [vmem:[%s1222_s25 + $0x70] sm:$0xff] %vm624_vm1, %v536_v45  ;;  %655 = vst.msk [vmem:[%s1222_s25 + $0xf0] sm:$0xff] %vm624_vm1, %v616_v47 }
 0x1c9 PF: > { %s16_s17 = sadd.s32 1, %s1042_s17   ;;  %s1345_s12 = smov %s1026_s13 }
 0x1ca   : > { %p13_p9 = scmp.ge.s32.totalorder %s16_s17, 4   ;;  %s1346_s13 = smov %s1030_s14 }
 0x1cb   : > { %s1347_s14 = smov %s1116_s24  ;;  %s1348_s15 = smov %s1038_s16 }
 0x1cc   : > { %s1349_s16 = smov %s1351_s19  ;;  %15 = sbr.rel (!%p13_p9) target bundleno = 4 (0x4), region = 72 }
 0x1d3   :  { %687 = vsyncpa [#allocation3], 1 }
 0x1d4   :  { %689 = vsyncpa [#allocation3 + $0x1], 1 }

</bundles_post_ra>
